<compile_context>
chip_gen: v6e
topology: v6e:2x2x1
jax: 0.10.0
libtpu: 0.0.40
codegen_flags: <defaults>
</compile_context>

<pallas_src>
import functools

import jax
import jax.numpy as jnp
from jax.experimental import pallas as pl
from jax.experimental.pallas import tpu as pltpu


# --------------------------------------------------------------------------
# Helpers
# --------------------------------------------------------------------------
def _fast_recip(x):
    """EUP approximate reciprocal refined with one Newton step (~f32 exact)."""
    r = pl.reciprocal(x, approx=True)
    return r * (2.0 - x * r)


def _vmem_budget():
    """Generation-aware (input DMA budget, vmem_limit_bytes)."""
    try:
        cap = int(pltpu.get_tpu_info().vmem_capacity_bytes)
        if cap <= 0:
            raise ValueError
    except Exception:
        cap = 64 * 1024 * 1024  # conservative fallback (v7x-sized)
    # ~1/3 of physical VMEM for the double-buffered input tiles, leaving
    # headroom for compiler scratch / intermediates; cap the scoped limit.
    input_budget = min(cap // 3, 48 * 1024 * 1024)
    vmem_limit = min((3 * cap) // 4, 96 * 1024 * 1024)
    return input_budget, vmem_limit


def _choose_block_rows(n, c, pred_itemsize, indexed, tgt_itemsize, block_rows=None):
    input_budget, vmem_limit = _vmem_budget()
    c_pad = ((c + 127) // 128) * 128                 # lane padding in VMEM

    # Per-row VMEM bytes (double-buffered inputs + f32 compute temporaries).
    per_row = c_pad * pred_itemsize * 2              # pred double buffer
    if indexed:
        per_row += 128 * 4 * 2                       # lane-padded (tm,1) i32 blocks
    else:
        per_row += c_pad * tgt_itemsize * 2          # dense target double buffer
    per_row += 4 * c_pad * 4                         # softmax / f1 f32 intermediates

    if block_rows is None:
        block_rows = max(8, input_budget // max(per_row, 1))
        block_rows = min(int(block_rows), 8192)      # raised cap for small C

    if block_rows >= n:
        return n, vmem_limit                         # single block == full extent

    # Keep whole packed-sublane row groups: 8 rows/vreg for 32-bit logits,
    # 16 for bf16/f16, 32 for 8-bit dtypes.
    gran = max(8, 32 // max(int(pred_itemsize), 1))
    tm = max(gran, (int(block_rows) // gran) * gran)
    return tm, vmem_limit


def _softmax_rows(pred_ref, valid):
    """Masked, numerically stable softmax of the current logits tile."""
    logits = jnp.where(valid, pred_ref[...].astype(jnp.float32), 0.0)
    m = jnp.max(logits, axis=-1, keepdims=True)
    e = jnp.exp(logits - m)
    return e * _fast_recip(jnp.sum(e, axis=-1, keepdims=True))


# --------------------------------------------------------------------------
# Kernels (one per (target-kind, averaging) combination; all write per-tile
# partial outputs so the grid axis is fully parallel — no shared scratch).
# --------------------------------------------------------------------------
def _index_micro_kernel(pred_ref, idx_ref, out_ref, *, n_rows):
    i = pl.program_id(0)
    tm, c = pred_ref.shape
    row = i * tm + jax.lax.broadcasted_iota(jnp.int32, (tm, 1), 0)
    valid = row < n_rows                                               # (tm, 1)

    p = _softmax_rows(pred_ref, valid)

    # In-kernel one-hot (no HBM traffic for the target matrix).  Invalid rows
    # get the -1 sentinel so their one-hot is empty -> f1_row == 0.
    idx = jnp.where(valid, idx_ref[...], -1)                           # (tm, 1)
    cls = jax.lax.broadcasted_iota(jnp.int32, (tm, c), 1)
    onehot = cls == idx                                                # (tm, c)

    # One-hot targets: f1_row = 2*p_y / (p_y + 1 + 2e-8)
    #                        == tp / (tp + 0.5*(fp+fn) + 1e-8)
    p_y = jnp.sum(jnp.where(onehot, p, 0.0), axis=-1, keepdims=True)   # (tm, 1)
    f1_row = (2.0 * p_y) * _fast_recip(p_y + (1.0 + 2e-8))

    out_ref[...] = jnp.sum(f1_row, axis=0, keepdims=True).reshape(1, 1, 1)


def _index_macro_kernel(pred_ref, idx_ref, f1_ref, cnt_ref, *, n_rows):
    i = pl.program_id(0)
    tm, c = pred_ref.shape
    row = i * tm + jax.lax.broadcasted_iota(jnp.int32, (tm, 1), 0)
    valid = row < n_rows

    p = _softmax_rows(pred_ref, valid)

    idx = jnp.where(valid, idx_ref[...], -1)
    cls = jax.lax.broadcasted_iota(jnp.int32, (tm, c), 1)
    onehot = cls == idx

    p_y = jnp.sum(jnp.where(onehot, p, 0.0), axis=-1, keepdims=True)
    f1_row = (2.0 * p_y) * _fast_recip(p_y + (1.0 + 2e-8))

    # select (not cast+mul) scatters the row f1 into its target column.
    f1_cols = jnp.sum(jnp.where(onehot, f1_row, 0.0), axis=0, keepdims=True)
    cnt_cols = jnp.sum(onehot.astype(jnp.float32), axis=0, keepdims=True)
    f1_ref[...] = f1_cols.reshape(1, 1, c)
    cnt_ref[...] = cnt_cols.reshape(1, 1, c)


def _dense_micro_kernel(pred_ref, tgt_ref, out_ref, *, n_rows):
    i = pl.program_id(0)
    tm, c = pred_ref.shape
    row = i * tm + jax.lax.broadcasted_iota(jnp.int32, (tm, 1), 0)
    valid = row < n_rows

    p = _softmax_rows(pred_ref, valid)
    t = jnp.where(valid, tgt_ref[...].astype(jnp.float32), 0.0)

    # tp + 0.5*(fp + fn) == 0.5*(p + t)  =>  f1 = 2*t*p / (p + t + 2e-8).
    f1 = (2.0 * t * p) * _fast_recip(p + t + 2e-8)

    row_f1 = jnp.sum(f1, axis=1, keepdims=True)                        # (tm, 1)
    out_ref[...] = jnp.sum(row_f1, axis=0, keepdims=True).reshape(1, 1, 1)


def _dense_macro_kernel(pred_ref, tgt_ref, f1_ref, cnt_ref, *, n_rows):
    i = pl.program_id(0)
    tm, c = pred_ref.shape
    row = i * tm + jax.lax.broadcasted_iota(jnp.int32, (tm, 1), 0)
    valid = row < n_rows

    p = _softmax_rows(pred_ref, valid)
    t = jnp.where(valid, tgt_ref[...].astype(jnp.float32), 0.0)

    f1 = (2.0 * t * p) * _fast_recip(p + t + 2e-8)

    f1_ref[...] = jnp.sum(f1, axis=0, keepdims=True).reshape(1, 1, c)
    cnt_ref[...] = jnp.sum(t, axis=0, keepdims=True).reshape(1, 1, c)


# --------------------------------------------------------------------------
# Wrapper
# --------------------------------------------------------------------------
def soft_f1_loss(y_pred, y_target, avg="micro", block_rows=None):
    """Pallas implementation of softF1Loss. Returns a scalar float32 loss."""
    y_pred = jnp.asarray(y_pred)
    y_target = jnp.asarray(y_target)
    n, c = y_pred.shape
    indexed = y_target.ndim == 1

    pred_itemsize = jnp.dtype(y_pred.dtype).itemsize
    if indexed:
        tgt = y_target.astype(jnp.int32).reshape(n, 1)
        tgt_itemsize = 4
    else:
        tgt = y_target                               # native dtype; upcast in-kernel
        tgt_itemsize = jnp.dtype(tgt.dtype).itemsize

    tm, vmem_limit = _choose_block_rows(n, c, pred_itemsize, indexed,
                                        tgt_itemsize, block_rows)
    grid_n = pl.cdiv(n, tm)
    tgt_block = (tm, 1) if indexed else (tm, c)

    if indexed:
        kernel_fn = _index_macro_kernel if avg == "macro" else _index_micro_kernel
    else:
        kernel_fn = _dense_macro_kernel if avg == "macro" else _dense_micro_kernel
    kernel = functools.partial(kernel_fn, n_rows=n)

    in_specs = [
        pl.BlockSpec((tm, c), lambda i: (i, 0)),
        pl.BlockSpec(tgt_block, lambda i: (i, 0)),
    ]
    compiler_params = pltpu.CompilerParams(
        dimension_semantics=("parallel",),           # fully independent row tiles
        vmem_limit_bytes=vmem_limit,
    )
    # TODO(synk): if an xprof trace on v7x shows exposed DMA gaps, sweep
    # pipeline_mode=pl.Buffered(3) on the logits BlockSpec.

    if avg == "macro":
        f1_part, cnt_part = pl.pallas_call(
            kernel,
            out_shape=(jax.ShapeDtypeStruct((grid_n, 1, c), jnp.float32),
                       jax.ShapeDtypeStruct((grid_n, 1, c), jnp.float32)),
            grid=(grid_n,),
            in_specs=in_specs,
            out_specs=(pl.BlockSpec((1, 1, c), lambda i: (i, 0, 0)),
                       pl.BlockSpec((1, 1, c), lambda i: (i, 0, 0))),
            compiler_params=compiler_params,
        )(y_pred, tgt)
        # Tiny final reduction in plain JAX (exact divides).  Note: like the
        # PyTorch reference, a class absent from the batch yields NaN/Inf.
        per_class = jnp.sum(f1_part, axis=(0, 1)) / jnp.sum(cnt_part, axis=(0, 1))
        return 1.0 - jnp.mean(per_class)
    else:
        part = pl.pallas_call(
            kernel,
            out_shape=jax.ShapeDtypeStruct((grid_n, 1, 1), jnp.float32),
            grid=(grid_n,),
            in_specs=in_specs,
            out_specs=pl.BlockSpec((1, 1, 1), lambda i: (i, 0, 0)),
            compiler_params=compiler_params,
        )(y_pred, tgt)
        return 1.0 - jnp.sum(part) / n


class SoftF1Loss:
    """Mirror of the PyTorch nn.Module (no parameters)."""

    def __init__(self, avg="micro"):
        self.avg = avg

    def __call__(self, y_pred, y_target):
        return soft_f1_loss(y_pred, y_target, avg=self.avg)


# --------------------------------------------------------------------------
# Pure-JAX reference (identical math to the PyTorch module)
# --------------------------------------------------------------------------
def _reference_soft_f1_loss(y_pred, y_target, avg="micro"):
    y_pred = jnp.asarray(y_pred).astype(jnp.float32)
    y_target = jnp.asarray(y_target)
    if y_target.ndim == 1:
        y_target = jax.nn.one_hot(y_target, y_pred.shape[-1], dtype=jnp.float32)
    else:
        y_target = y_target.astype(jnp.float32)
    p = jax.nn.softmax(y_pred, axis=-1)
    t = y_target
    tp = t * p
    fp = (1.0 - t) * p
    fn = t * (1.0 - p)
    f1 = tp / (tp + 0.5 * (fp + fn) + 1e-8)
    if avg == "macro":
        f1 = jnp.sum(f1, axis=0) / jnp.sum(t, axis=0)
    else:
        f1 = jnp.sum(f1, axis=1)
    return 1.0 - jnp.mean(f1)


if __name__ == "__main__":
    key = jax.random.PRNGKey(0)
    k1, k2, k3, k4, k5 = jax.random.split(key, 5)

    checks = []

    # A) micro, int class-index targets, single tile (auto tiling).
    pred_a = jax.random.normal(k1, (8, 32), dtype=jnp.float32)
    tgt_a = jax.random.randint(k2, (8,), 0, 32, dtype=jnp.int32)
    checks.append((SoftF1Loss("micro")(pred_a, tgt_a),
                   _reference_soft_f1_loss(pred_a, tgt_a, "micro")))

    # B) micro, int targets, multi-tile grid with a ragged last tile.
    pred_b = jax.random.normal(k3, (70, 32), dtype=jnp.float32)
    tgt_b = jax.random.randint(k4, (70,), 0, 32, dtype=jnp.int32)
    checks.append((soft_f1_loss(pred_b, tgt_b, avg="micro", block_rows=16),
                   _reference_soft_f1_loss(pred_b, tgt_b, "micro")))

    # C) macro, int targets (every class present), multi-tile.
    pred_c = jax.random.normal(k5, (64, 8), dtype=jnp.float32)
    tgt_c = jnp.arange(64, dtype=jnp.int32) % 8
    checks.append((soft_f1_loss(pred_c, tgt_c, avg="macro", block_rows=16),
                   _reference_soft_f1_loss(pred_c, tgt_c, "macro")))

    # D) micro + E) macro with dense multi-label float targets, ragged tiles.
    tgt_d = jax.random.uniform(k2, (70, 32), dtype=jnp.float32)
    checks.append((soft_f1_loss(pred_b, tgt_d, avg="micro", block_rows=16),
                   _reference_soft_f1_loss(pred_b, tgt_d, "micro")))
    checks.append((soft_f1_loss(pred_b, tgt_d, avg="macro", block_rows=16),
                   _reference_soft_f1_loss(pred_b, tgt_d, "macro")))

    # F) native bf16 logits (no wrapper-side upcast).
    pred_f = pred_a.astype(jnp.bfloat16)
    checks.append((soft_f1_loss(pred_f, tgt_a, avg="micro"),
                   _reference_soft_f1_loss(pred_f, tgt_a, "micro")))

    for got, want in checks:
        got = jax.block_until_ready(got)
        want = jax.block_until_ready(want)
        assert jnp.allclose(got, want, atol=5e-3, rtol=5e-3), (got, want)

    print("KERNEL_OK")
</pallas_src>

<mosaic_0001>
module attributes {stable_mosaic.version = 11 : i64} {
  func.func @_index_micro_kernel(%arg0: i32, %arg1: memref<8x32xf32, #tpu.memory_space<vmem>>, %arg2: memref<8x1xi32, #tpu.memory_space<vmem>>, %arg3: memref<1x1x1xf32, #tpu.memory_space<vmem>>) attributes {dimension_semantics = [#tpu.dimension_semantics<parallel>], iteration_bounds = array<i64: 1>, scalar_prefetch = 0 : i64, scratch_operands = 0 : i64, tpu.core_type = #tpu.core_type<tc>, window_params = [{transform_indices = @transform_0, window_bounds = array<i64: 8, 32>}, {transform_indices = @transform_1, window_bounds = array<i64: 8, 1>}, {transform_indices = @transform_2, window_bounds = array<i64: 1, 1, 1>}]} {
    %c8_i32 = arith.constant 8 : i32
    %0 = arith.muli %arg0, %c8_i32 : i32
    %1 = tpu.iota {dimensions = array<i32: 0>} : vector<8x1xi32>
    %2 = vector.broadcast %0 : i32 to vector<8x1xi32>
    %3 = arith.addi %2, %1 : vector<8x1xi32>
    %c8_i32_0 = arith.constant 8 : i32
    %4 = vector.broadcast %c8_i32_0 : i32 to vector<8x1xi32>
    %5 = arith.cmpi slt, %3, %4 : vector<8x1xi32>
    %c0 = arith.constant 0 : index
    %c0_1 = arith.constant 0 : index
    %6 = vector.load %arg1[%c0, %c0_1] : memref<8x32xf32, #tpu.memory_space<vmem>>, vector<8x32xf32>
    %cst = arith.constant 0.000000e+00 : f32
    %7 = vector.shape_cast %5 : vector<8x1xi1> to vector<8x1xi1>
    %8 = vector.broadcast %7 : vector<8x1xi1> to vector<8x32xi1>
    %9 = vector.broadcast %cst : f32 to vector<8x32xf32>
    %10 = arith.select %8, %6, %9 : vector<8x32xi1>, vector<8x32xf32>
    %cst_2 = arith.constant dense<0xFF800000> : vector<8xf32>
    %11 = vector.multi_reduction <maximumf>, %10, %cst_2 [1] : vector<8x32xf32> to vector<8xf32>
    %12 = vector.shape_cast %11 : vector<8xf32> to vector<8x1xf32>
    %13 = vector.broadcast %12 : vector<8x1xf32> to vector<8x32xf32>
    %14 = arith.subf %10, %13 : vector<8x32xf32>
    %15 = math.exp %14 : vector<8x32xf32>
    %cst_3 = arith.constant dense<0.000000e+00> : vector<8xf32>
    %16 = vector.multi_reduction <add>, %15, %cst_3 [1] : vector<8x32xf32> to vector<8xf32>
    %17 = vector.shape_cast %16 : vector<8xf32> to vector<8x1xf32>
    %18 = tpu.reciprocal %17 {approx = true} : vector<8x1xf32> -> vector<8x1xf32>
    %19 = arith.mulf %17, %18 : vector<8x1xf32>
    %cst_4 = arith.constant 2.000000e+00 : f32
    %20 = vector.broadcast %cst_4 : f32 to vector<8x1xf32>
    %21 = arith.subf %20, %19 : vector<8x1xf32>
    %22 = arith.mulf %18, %21 : vector<8x1xf32>
    %23 = vector.broadcast %22 : vector<8x1xf32> to vector<8x32xf32>
    %24 = arith.mulf %15, %23 : vector<8x32xf32>
    %c0_5 = arith.constant 0 : index
    %c0_6 = arith.constant 0 : index
    %25 = vector.load %arg2[%c0_5, %c0_6] : memref<8x1xi32, #tpu.memory_space<vmem>>, vector<8x1xi32>
    %c-1_i32 = arith.constant -1 : i32
    %26 = vector.broadcast %c-1_i32 : i32 to vector<8x1xi32>
    %27 = arith.select %5, %25, %26 : vector<8x1xi1>, vector<8x1xi32>
    %28 = tpu.iota {dimensions = array<i32: 1>} : vector<8x32xi32>
    %29 = vector.broadcast %27 : vector<8x1xi32> to vector<8x32xi32>
    %30 = arith.cmpi eq, %28, %29 : vector<8x32xi32>
    %cst_7 = arith.constant 0.000000e+00 : f32
    %31 = vector.broadcast %cst_7 : f32 to vector<8x32xf32>
    %32 = arith.select %30, %24, %31 : vector<8x32xi1>, vector<8x32xf32>
    %cst_8 = arith.constant dense<0.000000e+00> : vector<8xf32>
    %33 = vector.multi_reduction <add>, %32, %cst_8 [1] : vector<8x32xf32> to vector<8xf32>
    %34 = vector.shape_cast %33 : vector<8xf32> to vector<8x1xf32>
    %cst_9 = arith.constant 2.000000e+00 : f32
    %35 = vector.broadcast %cst_9 : f32 to vector<8x1xf32>
    %36 = arith.mulf %35, %34 : vector<8x1xf32>
    %cst_10 = arith.constant 1.000000e+00 : f32
    %37 = vector.broadcast %cst_10 : f32 to vector<8x1xf32>
    %38 = arith.addf %34, %37 : vector<8x1xf32>
    %39 = tpu.reciprocal %38 {approx = true} : vector<8x1xf32> -> vector<8x1xf32>
    %40 = arith.mulf %38, %39 : vector<8x1xf32>
    %cst_11 = arith.constant 2.000000e+00 : f32
    %41 = vector.broadcast %cst_11 : f32 to vector<8x1xf32>
    %42 = arith.subf %41, %40 : vector<8x1xf32>
    %43 = arith.mulf %39, %42 : vector<8x1xf32>
    %44 = arith.mulf %36, %43 : vector<8x1xf32>
    %cst_12 = arith.constant dense<0.000000e+00> : vector<1xf32>
    %45 = vector.multi_reduction <add>, %44, %cst_12 [0] : vector<8x1xf32> to vector<1xf32>
    %46 = vector.shape_cast %45 : vector<1xf32> to vector<1x1xf32>
    %47 = vector.shape_cast %46 : vector<1x1xf32> to vector<1x1x1xf32>
    %c0_13 = arith.constant 0 : index
    %c0_14 = arith.constant 0 : index
    %c0_15 = arith.constant 0 : index
    %48 = vector.load %arg3[%c0_13, %c0_14, %c0_15] : memref<1x1x1xf32, #tpu.memory_space<vmem>>, vector<1x1x1xf32>
    tpu.vector_store %arg3[%c0_13, %c0_14, %c0_15], %47 {strides = array<i32>} : memref<1x1x1xf32, #tpu.memory_space<vmem>>, vector<1x1x1xf32>,
    return
  }
  func.func @transform_0(%arg0: i32) -> (i32, i32) {
    %c0_i32 = arith.constant 0 : i32
    %c0_i32_0 = arith.constant 0 : i32
    return %arg0, %c0_i32 : i32, i32
  }
  func.func @transform_1(%arg0: i32) -> (i32, i32) {
    %c0_i32 = arith.constant 0 : i32
    %c0_i32_0 = arith.constant 0 : i32
    return %arg0, %c0_i32 : i32, i32
  }
  func.func @transform_2(%arg0: i32) -> (i32, i32, i32) {
    %c0_i32 = arith.constant 0 : i32
    %c0_i32_0 = arith.constant 0 : i32
    %c0_i32_1 = arith.constant 0 : i32
    return %arg0, %c0_i32, %c0_i32_0 : i32, i32, i32
  }
}

</mosaic_0001>

<bundles_post_ra>
// kernel: tpu_custom_call.1
= control target key start
LH: loop header
LB: loop body
LE: loop exit
PB: predicated region body
PF: predicated region fallthrough
CT: control target
= control target key end

     0   :  { %vm22_vm0 = vcmask 261120   ;;  %s139_s0 = inlined_call_operand.vmem [shape: f32[8,32], index: 0, kind: input, shape index: {}]   ;;  %s140_s1 = inlined_call_operand.vmem [shape: s32[8,1], index: 1, kind: input, shape index: {}]   ;;  %s141_s2 = inlined_call_operand.hbm [shape: f32[1,1,1], index: 2, kind: output, shape index: {}]  }
   0x1   :  { %v18_v0 = vld [vmem:[%s139_s0] sm:$0xff] }
   0x2   :  { %7 = vsyncpa [#allocation3], 0  ;;  %v23_v1 = vsel %vm22_vm0, %v18_v0, -inf  ;;  %v37_v2 = vld [vmem:[%s140_s1] sm:$0xff]  ;;  %v110_v3 = vmov 0   ;;  %v39_v10 = vlaneseq  ;;  %s111_s0 = smov [#allocation2]  }
   0x3   :  { %24 = vmax.xlane.f32.xlu0 %v23_v1  ;;  %80 = vset.pattern.permute.xlu1 %v110_v3  ;;  %s70_s1 = sshll.u32 %s111_s0, 4  ;;  %vm62_vm2 = vcmask 0   ;;  %s71_s1 = int_to_ptr.vmem [resolvable:$true] %s70_s1 }
   0x4   :  { %81 = vset.pattern.permute.xlu0 %v110_v3  ;;  %42 = vperm.xlu1 %80, %v37_v2   ;;  %v40_v13 = vand.u32 127, %v39_v10  ;;  %s88_s13 = scalar_lea.vmem %s71_s1, 16  ;;  %s92_s14 = scalar_lea.vmem %s71_s1, 32 }
   0x5   :  { %p89_p0 = scmp.ne.s32.totalorder %s71_s1, %s88_s13  ;;  %p93_p1 = scmp.lt.s32.totalorder %s71_s1, %s71_s1 }
   0x6   :  { %p94_p2 = scmp.lt.s32.totalorder %s92_s14, %s88_s13 }
   0x8   :  { %p95_p3 = por %p94_p2, %p93_p1 }
   0xa   :  { %p96_p4 = pnand %p95_p3, %p89_p0 }
  0x7f   :  { %v43_v15 = vpop.permute.xlu1 %42 }
  0x80   :  { %vm44_vm1 = vcmp.eq.s32.totalorder %v40_v13, %v43_v15 }
  0x8c   :  { %v25_v4 = vpop.xlane.xlu0 %24 }
  0x8d   :  { %v26_v5 = vsub.f32 %v18_v0, %v25_v4 }
  0x8f   :  { %v27_v6 = vmul.f32 1.442695, %v26_v5 }
  0x91   :  { %82 = vpow2.f32 %v27_v6 }
  0x9e   :  { %v83_v7 = vpop.eup %82 }
  0x9f   :  { %v29_v8 = vsel %vm22_vm0, %v83_v7, 0.0 }
  0xa0   :  { %30 = vadd.xlane.f32.xlu0 %v29_v8 }
 0x129   :  { %v31_v9 = vpop.xlane.xlu0 %30 }
 0x12a   :  { %84 = vrcp.f32 %v31_v9 }
 0x137   :  { %v85_v11 = vpop.eup %84 }
 0x138   :  { %v33_v12 = vmul.f32 %v85_v11, %v31_v9 }
 0x13a   :  { %v34_v14 = vsub.f32 2.0, %v33_v12 }
 0x13c   :  { %v35_v16 = vmul.f32 %v85_v11, %v34_v14 }
 0x13e   :  { %v36_v17 = vmul.f32 %v83_v7, %v35_v16 }
 0x140   :  { %v45_v18 = vsel %vm44_vm1, %v36_v17, 0.0 }
 0x141   :  { %v46_v19 = vsel %vm22_vm0, %v45_v18, 0.0 }
 0x142   :  { %47 = vadd.xlane.f32.xlu1 %v46_v19 }
 0x1cb   :  { %v48_v20 = vpop.xlane.xlu1 %47 }
 0x1cc   :  { %v50_v21 = vadd.f32 1.0, %v48_v20  ;;  %v49_v25 = vmul.f32 2.0, %v48_v20 }
 0x1ce   :  { %86 = vrcp.f32 %v50_v21 }
 0x1db   :  { %v87_v22 = vpop.eup %86 }
 0x1dc   :  { %v52_v23 = vmul.f32 %v87_v22, %v50_v21 }
 0x1de   :  { %v53_v24 = vsub.f32 2.0, %v52_v23 }
 0x1e0   :  { %v54_v26 = vmul.f32 %v87_v22, %v53_v24 }
 0x1e2   :  { %v55_v27 = vmul.f32 %v54_v26, %v49_v25 }
 0x1e4   :  { %v56_v28 = vrot.slane %v55_v27, 4 }
 0x1e6   :  { %v57_v29 = vadd.f32 %v56_v28, %v55_v27 }
 0x1e8   :  { %v58_v30 = vrot.slane %v57_v29, 2 }
 0x1ea   :  { %v59_v31 = vadd.f32 %v58_v30, %v57_v29 }
 0x1ec   :  { %v60_v32 = vrot.slane %v59_v31, 1 }
 0x1ee   :  { %v61_v33 = vadd.f32 %v60_v32, %v59_v31 }
 0x1f0   :  { %63 = vst.msk [vmem:[#allocation2] sm:$0x1] %vm62_vm2, %v61_v33 }
 0x1f1   :  { %99 = shalt.err (!%p96_p4)
}
 0x1f2   :  { %73 = dma.vmem_to_hbm [thread:$0]  %s71_s1, 16, %s141_s2, [#allocation3]  }
 0x1f3   :  { %108 = dma.done.wait [#allocation3], 16  }
 0x1f4   :  { %109 = vsyncadd [#allocation3], 4294967280 }
 0x1f5   :  { %77 = vsyncpa [#allocation3], 1 }

</bundles_post_ra>
